<compile_context>
chip_gen: v7x
topology: tpu7x:2x2x1
jax: 0.10.0
libtpu: 0.0.40
codegen_flags: <defaults>
</compile_context>

<pallas_src>
import functools
import math

import jax
import jax.numpy as jnp
from jax.experimental import pallas as pl
from jax.experimental.pallas import tpu as pltpu

LN_EPS = 1e-12  # RobertaPreLayerNormConfig default layer_norm_eps


def _round_up(a: int, b: int) -> int:
    return (a + b - 1) // b * b


def _vmem_cap_bytes() -> int:
    """Generation-aware VMEM cap: v7x has 64 MiB/TC, v5e/v6e have 128 MiB."""
    try:
        kind = jax.devices()[0].device_kind.lower()
    except Exception:  # non-TPU / unknown backend: be conservative
        kind = ""
    if "v7" in kind:
        return 56 * 2**20
    return 100 * 2**20


def _const_block_spec(block_shape, index_map):
    """BlockSpec for blocks whose block index never changes.

    A single pipeline buffer is enough for them; double-buffering the dense
    weight / biases / LN params only burns VMEM (matters most on v7x).
    Falls back to a plain BlockSpec if pipeline_mode/Buffered is unavailable.
    """
    if hasattr(pl, "Buffered"):
        try:
            return pl.BlockSpec(block_shape, index_map,
                                pipeline_mode=pl.Buffered(1))
        except TypeError:
            pass
    return pl.BlockSpec(block_shape, index_map)


def _lm_head_kernel(feat_ref, w1_ref, b1_ref, gamma_ref, beta_ref,
                    w2_ref, dec_bias_ref, out_ref, h_scr):
    """Grid: (row tiles, vocab tiles); vocab is the inner (fast) axis.

    At vocab index 0 for each row tile, the shared intermediate
    h = LayerNorm(gelu(dense(features))) is computed once (f32 math) into
    bf16 VMEM scratch; every vocab step then does one [tn, H] x [H, tv] bf16
    MXU matmul with f32 accumulation plus bias.
    """
    @pl.when(pl.program_id(1) == 0)
    def _():
        # cast features to bf16 inside the kernel (no wrapper-side HBM pass)
        x = feat_ref[...].astype(jnp.bfloat16)
        # dense: bf16 x bf16 -> f32 accumulate
        h = jnp.dot(x, w1_ref[...], preferred_element_type=jnp.float32)
        h = h + b1_ref[...]
        # exact GELU (erf form), matching transformers' `gelu` (f32)
        h = 0.5 * h * (1.0 + jax.lax.erf(h * (1.0 / math.sqrt(2.0))))
        # LayerNorm over hidden axis (f32; eps below bf16 resolution -> f32)
        mu = jnp.mean(h, axis=-1, keepdims=True)
        var = jnp.mean((h - mu) * (h - mu), axis=-1, keepdims=True)
        h = (h - mu) * jax.lax.rsqrt(var + LN_EPS)
        h = h * gamma_ref[...] + beta_ref[...]
        h_scr[...] = h.astype(h_scr.dtype)

    # decoder tile: bf16 [tn, H] @ bf16 [H, tv] -> f32, + bias
    logits = jnp.dot(h_scr[...], w2_ref[...],
                     preferred_element_type=jnp.float32)
    out_ref[...] = (logits + dec_bias_ref[...]).astype(out_ref.dtype)


def prepare_params(params, *, vocab_multiple=1024):
    """One-time (load-time) weight prep.

    * transpose to [in, out], cast to bf16
    * zero-pad the vocab dim up to a multiple of `vocab_multiple` so the real
      RoBERTa vocab (e.g. 50265) tiles lane-dense (multiple of 128) without
      masked partial stores; padded logits are sliced off in the wrapper.
    """
    vocab_multiple = max(int(vocab_multiple), 128)
    dense_w_t = jnp.asarray(params["dense_w"]).T.astype(jnp.bfloat16)       # [H, H]
    decoder_w = jnp.asarray(params["decoder_w"])                            # [V, H]
    decoder_b = jnp.asarray(params["decoder_b"], jnp.float32)               # [V]
    V, _ = decoder_w.shape
    V_pad = _round_up(V, vocab_multiple)
    decoder_w_t = decoder_w.T.astype(jnp.bfloat16)                          # [H, V]
    if V_pad != V:
        decoder_w_t = jnp.pad(decoder_w_t, ((0, 0), (0, V_pad - V)))
        decoder_b = jnp.pad(decoder_b, (0, V_pad - V))
    return {
        "dense_w_t": dense_w_t,                                             # [H, H] bf16
        "dense_b": jnp.asarray(params["dense_b"], jnp.float32)[None, :],    # [1, H]
        "ln_gamma": jnp.asarray(params["ln_gamma"], jnp.float32)[None, :],  # [1, H]
        "ln_beta": jnp.asarray(params["ln_beta"], jnp.float32)[None, :],    # [1, H]
        "decoder_w_t": decoder_w_t,                                         # [H, Vp] bf16
        "decoder_b": decoder_b[None, :],                                    # [1, Vp]
    }


def roberta_prelayernorm_lm_head(features, prepared, *, tn=1024, tv=1024,
                                 vocab_size=None, out_dtype=jnp.bfloat16):
    """features: [B, S, H] -> logits [B, S, vocab_size] (out_dtype, default bf16)."""
    B, S, H = features.shape
    N = B * S
    V_pad = prepared["decoder_w_t"].shape[1]
    if vocab_size is None:
        vocab_size = V_pad
    assert vocab_size <= V_pad
    assert prepared["dense_w_t"].shape == (H, H)
    assert V_pad % 128 == 0, "prepare_params must pad vocab to a lane multiple"

    # --- row tile: never shrink below one full tile via gcd; pad rows instead ---
    tn_eff = min(tn, _round_up(N, 8))        # always a multiple of 8
    N_pad = _round_up(N, tn_eff)
    # NOTE(v7x megacore): for best load balance pick tn so N_pad // tn_eff is even.

    # --- vocab tile: lane-dense divisor of the (padded) vocab ---
    tv_eff = min(tv, V_pad)
    if V_pad % tv_eff != 0:
        tv_eff = 128
        for cand in range((min(tv, V_pad) // 128) * 128, 127, -128):
            if V_pad % cand == 0:
                tv_eff = cand
                break

    x2d = features.reshape(N, H)
    if N_pad != N:
        x2d = jnp.pad(x2d, ((0, N_pad - N), (0, 0)))

    grid = (N_pad // tn_eff, V_pad // tv_eff)

    grid_spec = pltpu.PrefetchScalarGridSpec(
        num_scalar_prefetch=0,
        grid=grid,
        in_specs=[
            pl.BlockSpec((tn_eff, H), lambda i, j: (i, 0)),      # features
            _const_block_spec((H, H), lambda i, j: (0, 0)),      # dense W^T (bf16)
            _const_block_spec((1, H), lambda i, j: (0, 0)),      # dense bias
            _const_block_spec((1, H), lambda i, j: (0, 0)),      # LN gamma
            _const_block_spec((1, H), lambda i, j: (0, 0)),      # LN beta
            pl.BlockSpec((H, tv_eff), lambda i, j: (0, j)),      # decoder W^T tile (bf16)
            pl.BlockSpec((1, tv_eff), lambda i, j: (0, j)),      # decoder bias tile
        ],
        out_specs=pl.BlockSpec((tn_eff, tv_eff), lambda i, j: (i, j)),
        scratch_shapes=[pltpu.VMEM((tn_eff, H), jnp.bfloat16)],  # h per row tile
    )

    x_isz = jnp.dtype(features.dtype).itemsize
    out_isz = jnp.dtype(out_dtype).itemsize

    # VMEM budget (pipeline buffers + scratch) with headroom, capped per TPU gen.
    est = (2 * tn_eff * H * x_isz        # features tile (double-buffered)
           + H * H * 2                   # dense weight (single-buffered)
           + 2 * H * tv_eff * 2          # decoder weight tile (double-buffered)
           + 2 * tn_eff * tv_eff * out_isz   # output tile (double-buffered)
           + tn_eff * H * 2              # h scratch (bf16)
           + (3 * H + 2 * tv_eff) * 4)   # biases / gamma / beta
    vmem_limit = int(min(_vmem_cap_bytes(), max(32 * 2**20, int(1.5 * est))))

    n_row_tiles = N_pad // tn_eff
    cost = pl.CostEstimate(
        flops=int(2 * N_pad * H * H + 2 * N_pad * H * V_pad),
        transcendentals=int(N_pad * H),
        bytes_accessed=int(N_pad * H * x_isz
                           + H * H * 2
                           + n_row_tiles * H * V_pad * 2   # decoder W re-streamed per row tile
                           + N_pad * V_pad * out_isz
                           + (3 * H + V_pad) * 4),
    )

    out2d = pl.pallas_call(
        _lm_head_kernel,
        out_shape=jax.ShapeDtypeStruct((N_pad, V_pad), out_dtype),
        grid_spec=grid_spec,
        compiler_params=pltpu.CompilerParams(
            dimension_semantics=("parallel", "arbitrary"),
            vmem_limit_bytes=vmem_limit,
        ),
        cost_estimate=cost,
    )(x2d, prepared["dense_w_t"], prepared["dense_b"], prepared["ln_gamma"],
      prepared["ln_beta"], prepared["decoder_w_t"], prepared["decoder_b"])

    return out2d[:N, :vocab_size].reshape(B, S, vocab_size)


def _reference(features, params):
    """Pure-JAX reference matching the kernel's precision policy
    (bf16 matmul operands, f32 accumulation, f32 GELU/LayerNorm)."""
    B, S, H = features.shape
    x = features.reshape(-1, H).astype(jnp.bfloat16)
    w1 = params["dense_w"].astype(jnp.bfloat16)
    h = jnp.dot(x, w1.T, preferred_element_type=jnp.float32) + params["dense_b"]
    h = 0.5 * h * (1.0 + jax.lax.erf(h * (1.0 / math.sqrt(2.0))))
    mu = jnp.mean(h, axis=-1, keepdims=True)
    var = jnp.mean((h - mu) ** 2, axis=-1, keepdims=True)
    h = (h - mu) * jax.lax.rsqrt(var + LN_EPS)
    h = h * params["ln_gamma"] + params["ln_beta"]
    h = h.astype(jnp.bfloat16)
    w2 = params["decoder_w"].astype(jnp.bfloat16)
    out = jnp.dot(h, w2.T, preferred_element_type=jnp.float32) + params["decoder_b"]
    return out.reshape(B, S, -1)  # f32


if __name__ == "__main__":
    # Small config chosen to exercise row padding (N=14 -> 16), vocab padding
    # (1000 -> 1024) and vocab tiling (tv=512 -> 2 vocab tiles).
    B, S, H, V = 2, 7, 256, 1000

    key = jax.random.PRNGKey(0)
    k = jax.random.split(key, 4)
    features = jax.random.normal(k[0], (B, S, H), dtype=jnp.float32)
    raw_params = {
        # PyTorch nn.Linear convention: weight is [out_features, in_features]
        "dense_w": jax.random.normal(k[1], (H, H), dtype=jnp.float32) * 0.02,
        "dense_b": jax.random.normal(k[2], (H,), dtype=jnp.float32) * 0.02,
        "ln_gamma": jnp.ones((H,), dtype=jnp.float32),
        "ln_beta": jnp.zeros((H,), dtype=jnp.float32),
        "decoder_w": jax.random.normal(k[3], (V, H), dtype=jnp.float32) * 0.02,
        # decoder.bias is tied to self.bias (zeros at init in the module)
        "decoder_b": jnp.zeros((V,), dtype=jnp.float32),
    }

    # One-time weight prep (transpose + bf16 cast + vocab padding).
    prepared = prepare_params(raw_params, vocab_multiple=512)

    # Small tiles for the toy shapes so the 2-D grid is exercised;
    # production defaults are tn=1024, tv=1024.
    fwd = jax.jit(functools.partial(roberta_prelayernorm_lm_head,
                                    tn=1024, tv=512, vocab_size=V))

    out = fwd(features, prepared)
    out = jax.block_until_ready(out)

    ref = _reference(features, raw_params)
    assert out.shape == (B, S, V), out.shape
    out_f32 = out.astype(jnp.float32)
    max_err = float(jnp.max(jnp.abs(out_f32 - ref)))
    assert jnp.allclose(out_f32, ref, atol=3e-2, rtol=3e-2), max_err

    print("KERNEL_OK")
</pallas_src>

<mosaic_0001>
module attributes {stable_mosaic.version = 11 : i64} {
  func.func @_lm_head_kernel(%arg0: i32, %arg1: i32, %arg2: memref<16x256xf32, #tpu.memory_space<vmem>>, %arg3: memref<256x256xbf16, #tpu.memory_space<vmem>>, %arg4: memref<1x256xf32, #tpu.memory_space<vmem>>, %arg5: memref<1x256xf32, #tpu.memory_space<vmem>>, %arg6: memref<1x256xf32, #tpu.memory_space<vmem>>, %arg7: memref<256x512xbf16, #tpu.memory_space<vmem>>, %arg8: memref<1x512xf32, #tpu.memory_space<vmem>>, %arg9: memref<16x512xbf16, #tpu.memory_space<vmem>>, %arg10: memref<16x256xbf16, #tpu.memory_space<vmem>>) attributes {dimension_semantics = [#tpu.dimension_semantics<parallel>, #tpu.dimension_semantics<arbitrary>], iteration_bounds = array<i64: 1, 2>, scalar_prefetch = 0 : i64, scratch_operands = 1 : i64, tpu.core_type = #tpu.core_type<tc>, window_params = [{transform_indices = @transform_0, window_bounds = array<i64: 16, 256>}, {pipeline_mode = #tpu.pipeline_mode<synchronous>, transform_indices = @transform_1, window_bounds = array<i64: 256, 256>}, {pipeline_mode = #tpu.pipeline_mode<synchronous>, transform_indices = @transform_2, window_bounds = array<i64: 1, 256>}, {pipeline_mode = #tpu.pipeline_mode<synchronous>, transform_indices = @transform_3, window_bounds = array<i64: 1, 256>}, {pipeline_mode = #tpu.pipeline_mode<synchronous>, transform_indices = @transform_4, window_bounds = array<i64: 1, 256>}, {transform_indices = @transform_5, window_bounds = array<i64: 256, 512>}, {transform_indices = @transform_6, window_bounds = array<i64: 1, 512>}, {transform_indices = @transform_7, window_bounds = array<i64: 16, 512>}]} {
    %c0_i32 = arith.constant 0 : i32
    %0 = arith.cmpi eq, %arg1, %c0_i32 : i32
    %1 = arith.extui %0 : i1 to i32
    %c0_i32_0 = arith.constant 0 : i32
    %2 = arith.cmpi ne, %1, %c0_i32_0 : i32
    scf.if %2 {
      %c0_8 = arith.constant 0 : index
      %c0_9 = arith.constant 0 : index
      %11 = vector.load %arg2[%c0_8, %c0_9] : memref<16x256xf32, #tpu.memory_space<vmem>>, vector<16x256xf32>
      %12 = arith.truncf %11 : vector<16x256xf32> to vector<16x256xbf16>
      %c0_10 = arith.constant 0 : index
      %c0_11 = arith.constant 0 : index
      %13 = vector.load %arg3[%c0_10, %c0_11] : memref<256x256xbf16, #tpu.memory_space<vmem>>, vector<256x256xbf16>
      %cst_12 = arith.constant dense<0.000000e+00> : vector<16x256xf32>
      %14 = tpu.matmul %12, %13, %cst_12 {dimension_numbers = #tpu.dot_dimension_numbers<[1], [0], [0], [1], [0, 0, 1, 1], [], []>} : vector<16x256xbf16>, vector<256x256xbf16>, vector<16x256xf32> -> vector<16x256xf32>
      %c0_13 = arith.constant 0 : index
      %c0_14 = arith.constant 0 : index
      %15 = vector.load %arg4[%c0_13, %c0_14] : memref<1x256xf32, #tpu.memory_space<vmem>>, vector<1x256xf32>
      %16 = vector.broadcast %15 : vector<1x256xf32> to vector<16x256xf32>
      %17 = arith.addf %14, %16 : vector<16x256xf32>
      %cst_15 = arith.constant 5.000000e-01 : f32
      %18 = vector.broadcast %cst_15 : f32 to vector<16x256xf32>
      %19 = arith.mulf %18, %17 : vector<16x256xf32>
      %cst_16 = arith.constant 0.707106769 : f32
      %20 = vector.broadcast %cst_16 : f32 to vector<16x256xf32>
      %21 = arith.mulf %17, %20 : vector<16x256xf32>
      %22 = math.erf %21 : vector<16x256xf32>
      %cst_17 = arith.constant 1.000000e+00 : f32
      %23 = vector.broadcast %cst_17 : f32 to vector<16x256xf32>
      %24 = arith.addf %23, %22 : vector<16x256xf32>
      %25 = arith.mulf %19, %24 : vector<16x256xf32>
      %cst_18 = arith.constant dense<0.000000e+00> : vector<16xf32>
      %26 = vector.multi_reduction <add>, %25, %cst_18 [1] : vector<16x256xf32> to vector<16xf32>
      %27 = vector.shape_cast %26 : vector<16xf32> to vector<16x1xf32>
      %cst_19 = arith.constant 2.560000e+02 : f32
      %28 = vector.broadcast %cst_19 : f32 to vector<16x1xf32>
      %29 = arith.divf %27, %28 : vector<16x1xf32>
      %30 = vector.broadcast %29 : vector<16x1xf32> to vector<16x256xf32>
      %31 = arith.subf %25, %30 : vector<16x256xf32>
      %32 = vector.broadcast %29 : vector<16x1xf32> to vector<16x256xf32>
      %33 = arith.subf %25, %32 : vector<16x256xf32>
      %34 = arith.mulf %31, %33 : vector<16x256xf32>
      %cst_20 = arith.constant dense<0.000000e+00> : vector<16xf32>
      %35 = vector.multi_reduction <add>, %34, %cst_20 [1] : vector<16x256xf32> to vector<16xf32>
      %36 = vector.shape_cast %35 : vector<16xf32> to vector<16x1xf32>
      %cst_21 = arith.constant 2.560000e+02 : f32
      %37 = vector.broadcast %cst_21 : f32 to vector<16x1xf32>
      %38 = arith.divf %36, %37 : vector<16x1xf32>
      %39 = vector.broadcast %29 : vector<16x1xf32> to vector<16x256xf32>
      %40 = arith.subf %25, %39 : vector<16x256xf32>
      %cst_22 = arith.constant 9.99999996E-13 : f32
      %41 = vector.broadcast %cst_22 : f32 to vector<16x1xf32>
      %42 = arith.addf %38, %41 : vector<16x1xf32>
      %43 = math.rsqrt %42 : vector<16x1xf32>
      %44 = vector.broadcast %43 : vector<16x1xf32> to vector<16x256xf32>
      %45 = arith.mulf %40, %44 : vector<16x256xf32>
      %c0_23 = arith.constant 0 : index
      %c0_24 = arith.constant 0 : index
      %46 = vector.load %arg5[%c0_23, %c0_24] : memref<1x256xf32, #tpu.memory_space<vmem>>, vector<1x256xf32>
      %47 = vector.broadcast %46 : vector<1x256xf32> to vector<16x256xf32>
      %48 = arith.mulf %45, %47 : vector<16x256xf32>
      %c0_25 = arith.constant 0 : index
      %c0_26 = arith.constant 0 : index
      %49 = vector.load %arg6[%c0_25, %c0_26] : memref<1x256xf32, #tpu.memory_space<vmem>>, vector<1x256xf32>
      %50 = vector.broadcast %49 : vector<1x256xf32> to vector<16x256xf32>
      %51 = arith.addf %48, %50 : vector<16x256xf32>
      %52 = arith.truncf %51 : vector<16x256xf32> to vector<16x256xbf16>
      %c0_27 = arith.constant 0 : index
      %c0_28 = arith.constant 0 : index
      %53 = vector.load %arg10[%c0_27, %c0_28] : memref<16x256xbf16, #tpu.memory_space<vmem>>, vector<16x256xbf16>
      tpu.vector_store %arg10[%c0_27, %c0_28], %52 {strides = array<i32>} : memref<16x256xbf16, #tpu.memory_space<vmem>>, vector<16x256xbf16>,
    } else {
    }
    %c0 = arith.constant 0 : index
    %c0_1 = arith.constant 0 : index
    %3 = vector.load %arg10[%c0, %c0_1] : memref<16x256xbf16, #tpu.memory_space<vmem>>, vector<16x256xbf16>
    %c0_2 = arith.constant 0 : index
    %c0_3 = arith.constant 0 : index
    %4 = vector.load %arg7[%c0_2, %c0_3] : memref<256x512xbf16, #tpu.memory_space<vmem>>, vector<256x512xbf16>
    %cst = arith.constant dense<0.000000e+00> : vector<16x512xf32>
    %5 = tpu.matmul %3, %4, %cst {dimension_numbers = #tpu.dot_dimension_numbers<[1], [0], [0], [1], [0, 0, 1, 1], [], []>} : vector<16x256xbf16>, vector<256x512xbf16>, vector<16x512xf32> -> vector<16x512xf32>
    %c0_4 = arith.constant 0 : index
    %c0_5 = arith.constant 0 : index
    %6 = vector.load %arg8[%c0_4, %c0_5] : memref<1x512xf32, #tpu.memory_space<vmem>>, vector<1x512xf32>
    %7 = vector.broadcast %6 : vector<1x512xf32> to vector<16x512xf32>
    %8 = arith.addf %5, %7 : vector<16x512xf32>
    %9 = arith.truncf %8 : vector<16x512xf32> to vector<16x512xbf16>
    %c0_6 = arith.constant 0 : index
    %c0_7 = arith.constant 0 : index
    %10 = vector.load %arg9[%c0_6, %c0_7] : memref<16x512xbf16, #tpu.memory_space<vmem>>, vector<16x512xbf16>
    tpu.vector_store %arg9[%c0_6, %c0_7], %9 {strides = array<i32>} : memref<16x512xbf16, #tpu.memory_space<vmem>>, vector<16x512xbf16>,
    return
  }
  func.func @transform_0(%arg0: i32, %arg1: i32) -> (i32, i32) {
    %c0_i32 = arith.constant 0 : i32
    %c0_i32_0 = arith.constant 0 : i32
    return %arg0, %c0_i32 : i32, i32
  }
  func.func @transform_1(%arg0: i32, %arg1: i32) -> (i32, i32) {
    %c0_i32 = arith.constant 0 : i32
    %c0_i32_0 = arith.constant 0 : i32
    %c0_i32_1 = arith.constant 0 : i32
    return %c0_i32, %c0_i32_0 : i32, i32
  }
  func.func @transform_2(%arg0: i32, %arg1: i32) -> (i32, i32) {
    %c0_i32 = arith.constant 0 : i32
    %c0_i32_0 = arith.constant 0 : i32
    %c0_i32_1 = arith.constant 0 : i32
    return %c0_i32, %c0_i32_0 : i32, i32
  }
  func.func @transform_3(%arg0: i32, %arg1: i32) -> (i32, i32) {
    %c0_i32 = arith.constant 0 : i32
    %c0_i32_0 = arith.constant 0 : i32
    %c0_i32_1 = arith.constant 0 : i32
    return %c0_i32, %c0_i32_0 : i32, i32
  }
  func.func @transform_4(%arg0: i32, %arg1: i32) -> (i32, i32) {
    %c0_i32 = arith.constant 0 : i32
    %c0_i32_0 = arith.constant 0 : i32
    %c0_i32_1 = arith.constant 0 : i32
    return %c0_i32, %c0_i32_0 : i32, i32
  }
  func.func @transform_5(%arg0: i32, %arg1: i32) -> (i32, i32) {
    %c0_i32 = arith.constant 0 : i32
    %c0_i32_0 = arith.constant 0 : i32
    return %c0_i32, %arg1 : i32, i32
  }
  func.func @transform_6(%arg0: i32, %arg1: i32) -> (i32, i32) {
    %c0_i32 = arith.constant 0 : i32
    %c0_i32_0 = arith.constant 0 : i32
    return %c0_i32, %arg1 : i32, i32
  }
  func.func @transform_7(%arg0: i32, %arg1: i32) -> (i32, i32) {
    %c0_i32 = arith.constant 0 : i32
    return %arg0, %arg1 : i32, i32
  }
}

</mosaic_0001>

<bundles_post_ra>
// kernel: roberta_prelayernorm_lm_head.1
= control target key start
LH: loop header
LB: loop body
LE: loop exit
PB: predicated region body
PF: predicated region fallthrough
CT: control target
= control target key end

     0   :  { %s2192_s0 = inlined_call_operand.vmem [shape: f32[16,256], index: 0, kind: input, shape index: {}]   ;;  %s2193_s1 = inlined_call_operand.hbm [shape: bf16[256,256], index: 1, kind: input, shape index: {}]   ;;  %s2194_s2 = inlined_call_operand.vmem [shape: f32[1,256], index: 2, kind: input, shape index: {}]   ;;  %s2195_s3 = inlined_call_operand.vmem [shape: f32[1,256], index: 3, kind: input, shape index: {}]   ;;  %s2196_s4 = inlined_call_operand.vmem [shape: f32[1,256], index: 4, kind: input, shape index: {}]   ;;  %s2197_s5 = inlined_call_operand.hbm [shape: bf16[256,1024], index: 5, kind: input, shape index: {}]   ;;  %s2198_s6 = inlined_call_operand.vmem [shape: f32[1,1024], index: 6, kind: input, shape index: {}]   ;;  %s2199_s7 = inlined_call_operand.vmem [shape: bf16[16,1024], index: 7, kind: output, shape index: {}]  }
   0x1   :  { %2206 = sst [smem:[#allocation11_spill]] %s2199_s7 }
   0x2   :  { %12 = vsyncpa [#allocation4], 0 }
   0x3   :  { %13 = vsyncpa [#allocation6], 0 }
   0x4   :  { %15 = vsyncpa [#allocation6 + $0x1], 0  ;;  %s1896_s24 = smov 0   ;;  %s1898_s25 = smov 0  }
   0x5   :  { %s1900_s26 = smov 0   ;;  %s1902_s27 = smov 0  }
   0x6   :  { %s1904_s28 = smov 0   ;;  %s1906_s29 = smov 0  }
   0x7 LB: > { %2207 = sst [smem:[#allocation10_spill]] %s1847_s29  ;;  %s1382_s30 = sadd.s32 4294967295, %s1847_s29   ;;  %s1847_s29 = sphi %s1906_s29, %s21_s29   ;;  %s1843_s28 = sphi %s1904_s28, %s2227_s28   ;;  %s1839_s27 = sphi %s1902_s27, %s2226_s27   ;;  %s1835_s26 = sphi %s1900_s26, %s2225_s26   ;;  %s1831_s25 = sphi %s1898_s25, %s2224_s25   ;;  %s1827_s24 = sphi %s1896_s24, %s2223_s24  }
   0x8   : > { %p157_p0 = scmp.ne.s32.totalorder %s1835_s26, %s1831_s25  ;;  %p158_p1 = scmp.eq.s32.totalorder %s1847_s29, 0 }
   0x9   : > { %p163_p2 = scmp.ne.s32.totalorder %s1831_s25, %s1827_s24  ;;  %p1929_p3 = scmp.eq.s32.totalorder %s1382_s30, 0 }
   0xa   : > { %p215_p4 = scmp.eq.s32.totalorder %s1382_s30, 1  ;;  %p159_p5 = por %p158_p1, %p157_p0 }
   0xb   : > { %s2208_s8 = scalar_select %p1929_p3, 1, 0 }
   0xc   : > { %p1384_p6 = scmp.ge.s32.totalorder %s1847_s29, 1  ;;  %p1936_p7 = por %p1929_p3, %p163_p2 }
   0xd   : > { %p1940_p8 = por %p215_p4, %p157_p0  ;;  %p228_p9 = scmp.lt.s32.totalorder %s1847_s29, 3 }
   0xe   : > { %s2209_s9 = scalar_select %p1936_p7, 1, 0 }
   0xf   : > { %s2210_s10 = scalar_select %p1940_p8, 1, 0 }
  0x10   : > { %p1945_p10 = pnand %p1384_p6, %p228_p9  ;;  %s1849_s12 = smov [#allocation3]  }
  0x11   : > { %s250_s13 = sshll.u32 %s1849_s12, 4  ;;  %p1523_p12 = scmp.lt.s32.totalorder %s1847_s29, 2  ;;  %s1949_s13 = int_to_ptr.vmem [resolvable:$true] %s250_s13 }
  0x12   : > { %s2211_s11 = scalar_select %p1945_p10, 1, 0 }
  0x13   : > { %p1514_p11 = pneg %p1945_p10  ;;  %p1960_p0 = pnand %p1523_p12, %p159_p5 }
  0x14   : > { %s30_s16 = sadd.s32 1, %s1843_s28  ;;  %s1735_s20 = scalar_lea.hbm %s2193_s1, 4096 }
  0x15   : > { %p1956_p13 = pnand %p1514_p11, %p1929_p3  ;;  %p1965_p1 = scmp.ge.s32.totalorder %s30_s16, 2 }
  0x16   : > { %s2213_s15 = scalar_select %p1960_p0, 1, 0 }
  0x17   : > { %s2214_s17 = scalar_select %p1965_p1, 1, 0 }
  0x18   : > { %p1736_p2 = scmp.ne.s32.totalorder %s2193_s1, %s1735_s20  ;;  %p1737_p4 = pneg %p1956_p13 }
  0x19   : > { %p1742_p9 = scmp.lt.u32.totalorder %s1735_s20, %s2193_s1 }
  0x1a   : > { %p1738_p6 = pnand %p1737_p4, %p1736_p2 }
  0x1c   : > { %p1739_p5 = pneg %p1738_p6 }
  0x1e   : > { %p1744_p11 = pnand %p1742_p9, %p1739_p5 }
  0x20   : > { %1747 = shalt.err (!%p1744_p11)
}
  0x21   : > { %s1748_s30 = scalar_lea.vmem %s1949_s13, 4096  ;;  %p1756_p3 = scmp.lt.s32.totalorder %s1949_s13, %s1949_s13 }
  0x22   : > { %p1749_p12 = scmp.ne.s32.totalorder %s1949_s13, %s1748_s30  ;;  %p1757_p10 = scmp.lt.s32.totalorder %s1748_s30, %s1748_s30 }
  0x24   : > { %p1751_p8 = pnand %p1749_p12, %p1737_p4  ;;  %p1758_p0 = por %p1757_p10, %p1756_p3 }
  0x26   : > { %p1752_p7 = pneg %p1751_p8 }
  0x28   : > { %p1759_p1 = pnand %p1758_p0, %p1752_p7 }
  0x2a   : > { %1762 = shalt.err (!%p1759_p1)
}
  0x2b   : > { %s1850_s12 = smov 128   ;;  %s1851_s18 = smov 8  }
  0x2c   : > { %1517 = dma.hbm_to_vmem [thread:$0]  (!%p1956_p13), %s2193_s1, 4096, %s1949_s13, [#allocation4], %s1850_s12, %s1850_s12, %s1851_s18  }
  0x2d   : > { %s150_s21 = sadd.s32 1, %s1835_s26  ;;  %p2215_p3 = scmp.ne.s32.totalorder %s2214_s17, 0 }
  0x2e   : > { %s273_s22 = sand.u32 1, %s1835_s26   ;;  %s1502_s23 = sshll.u32 %s1843_s28, 8 }
  0x2f   : > { %s2229_s16 = smov (%p2215_p3, %s30_s16), 0  ;;  %s1388_s30 = sshll.u32 %s273_s22, 9 }
  0x30   : > { %s147_s24 = ssub.s32 %s1843_s28, %s2229_s16  ;;  %s2002_s14 = scalar_lea.hbm %s2197_s5, %s1502_s23 }
  0x31   : > { %p148_p7 = scmp.eq.s32.totalorder %s147_s24, 0  ;;  %s277_s17 = scalar_lea.vmem [#allocation5], %s1388_s30 }
  0x32   : > { %s284_s12 = sshll.u32 %s277_s17, 4  ;;  %s2009_s18 = scalar_lea.sflag [#allocation6], %s273_s22  ;;  %s2007_s12 = int_to_ptr.vmem [resolvable:$true] %s284_s12 }
  0x33   : > { %s2005_s13 = scalar_select %p148_p7, %s1835_s26, %s150_s21  }
  0x34   : > { %s1763_s19 = scalar_lea.hbm %s2002_s14, 8192  ;;  %p2216_p10 = scmp.ne.s32.totalorder %s2213_s15, 0 }
  0x35   : > { %p1764_p8 = scmp.ne.s32.totalorder %s2002_s14, %s1763_s19  ;;  %s1768_s20 = scalar_lea.hbm %s2197_s5, 16384 }
  0x36   : > { %p1765_p13 = pneg %p2216_p10  ;;  %p1769_p2 = scmp.lt.u32.totalorder %s2002_s14, %s2197_s5 }
  0x37   : > { %p1770_p4 = scmp.lt.u32.totalorder %s1768_s20, %s1763_s19  ;;  %p1772_p5 = scmp.lt.u32.totalorder %s1763_s19, %s2002_s14 }
  0x38   : > { %p1766_p0 = pnand %p1765_p13, %p1764_p8 }
  0x39   : > { %p1771_p6 = por %p1770_p4, %p1769_p2 }
  0x3a   : > { %p1767_p1 = pneg %p1766_p0 }
  0x3b   : > { %p1773_p9 = por %p1772_p5, %p1771_p6 }
  0x3d   : > { %p1774_p11 = pnand %p1773_p9, %p1767_p1 }
  0x3f   : > { %1777 = shalt.err (!%p1774_p11)
}
  0x40   : > { %s1778_s22 = scalar_lea.vmem %s2007_s12, 8192  ;;  %s1852_s24 = smov [#allocation5]  }
  0x41   : > { %p1779_p12 = scmp.ne.s32.totalorder %s2007_s12, %s1778_s22  ;;  %s1783_s30 = sshll.u32 %s1852_s24, 4  ;;  %s1784_s30 = int_to_ptr.vmem [resolvable:$false] %s1783_s30 }
  0x42   : > { %s1785_s17 = scalar_lea.vmem %s1784_s30, 16384  ;;  %p1786_p8 = scmp.lt.s32.totalorder %s2007_s12, %s1784_s30 }
  0x43   : > { %p1781_p3 = pnand %p1779_p12, %p1765_p13  ;;  %p1787_p0 = scmp.lt.s32.totalorder %s1785_s17, %s1778_s22 }
  0x45   : > { %p1782_p7 = pneg %p1781_p3  ;;  %p1788_p2 = por %p1787_p0, %p1786_p8 }
  0x47   : > { %p1789_p4 = pnand %p1788_p2, %p1782_p7 }
  0x49   : > { %1792 = shalt.err (!%p1789_p4)
}
  0x4a   : > { %s1853_s19 = smov 512   ;;  %s1854_s7 = smov 256  }
  0x4b   : > { %s1855_s29 = smov 16   ;;  %p2217_p13 = scmp.ne.s32.totalorder %s2211_s11, 0 }
  0x4c   : > { %1521 = dma.hbm_to_vmem [thread:$0]  (!%p2216_p10), %s2002_s14, 8192, %s2007_s12, %s2009_s18, %s1853_s19, %s1854_s7, %s1855_s29  }
  0x4d   : > { %304 = sbr.rel (%p2217_p13) target bundleno = 1004 (0x3ec), region = 48  ;;  %p2218_p1 = scmp.ne.s32.totalorder (!%p2217_p13), %s2208_s8, 0 }
  0x54   : > { %1818 = dma.done.wait (%p2218_p1), [#allocation4], 4096  }
  0x55   : > { %1820 = vsyncadd (%p2218_p1), [#allocation4], 4294963200  ;;  %s310_s20 = sand.u32 1, %s1831_s25   ;;  %p2219_p6 = scmp.ne.s32.totalorder %s2209_s9, 0 }
  0x56   : > { %s1393_s21 = sshll.u32 %s310_s20, 9  ;;  %s311_s23 = scalar_lea.sflag [#allocation6], %s310_s20 }
  0x57   : > { %s2044_s22 = scalar_lea.vmem [#allocation5], %s1393_s21 }
  0x58   : > { %1822 = dma.done.wait (%p2219_p6), %s311_s23, 8192  }
  0x59   : > { %1824 = vsyncadd (%p2219_p6), %s311_s23, 4294959104  ;;  %s1394_s11 = sshll.u32 %s310_s20, 5  ;;  %s1395_s15 = sshll.u32 %s1839_s27, 2 }
  0x5a   : > { %p363_p10 = scmp.lt.s32.totalorder %s1395_s15, 7  ;;  %s2057_s18 = scalar_lea.vmem [#allocation7], %s1394_s11 }
  0x5b   : > { %p1396_p5 = scmp.ne.s32.totalorder %s1839_s27, 0 }
  0x5c   : > { %s2231_s15 = smov (!%p363_p10, %s1395_s15), 7  ;;  %v1579_v0 = vld [vmem:[#allocation3 + $0x4] ss:$8 sps:$4 sm:$0xff] (!%p1396_p5)   ;;  %v1581_v1 = vld [vmem:[#allocation3] ss:$8 sps:$4 sm:$0xff] (!%p1396_p5)   ;;  %v374_v13 = vld [vmem:[%s2192_s0 + $0x8] sm:$0xff] (!%p1396_p5)  ;;  %v413_v38 = vlaneseq (!%p1396_p5) }
  0x5d   : > { %s365_s12 = scalar_lea.vmem %s2198_s6, %s2231_s15  ;;  %372 = sbr.rel (%p1396_p5) target bundleno = 711 (0x2c7), region = 60  ;;  %583 = vmatprep.subr.bf16.mxu0 (!%p1396_p5), %v1579_v0  ;;  %v1582_v2 = vld [vmem:[#allocation3 + $0x14] ss:$8 sps:$4 sm:$0xff] (!%p1396_p5)   ;;  %v1584_v3 = vld [vmem:[#allocation3 + $0x10] ss:$8 sps:$4 sm:$0xff] (!%p1396_p5)   ;;  %v376_v14 = vld [vmem:[%s2192_s0 + $0x18] sm:$0xff] (!%p1396_p5) }
  0x5e   : > { %584 = vmatpush1.bf16.msra.mxu0 (!%p1396_p5), %v1581_v1  ;;  %v1585_v4 = vld [vmem:[#allocation3 + $0x24] ss:$8 sps:$4 sm:$0xff] (!%p1396_p5)   ;;  %v1587_v5 = vld [vmem:[#allocation3 + $0x20] ss:$8 sps:$4 sm:$0xff] (!%p1396_p5)   ;;  %v1588_v6 = vld [vmem:[#allocation3 + $0x34] ss:$8 sps:$4 sm:$0xff] (!%p1396_p5)   ;;  %v378_v15 = vpack.c.bf16 (!%p1396_p5), %v376_v14, %v374_v13 }
  0x5f   : > { %585 = vmatprep.subr.bf16.mxu0 (!%p1396_p5), %v1582_v2  ;;  %v1590_v7 = vld [vmem:[#allocation3 + $0x30] ss:$8 sps:$4 sm:$0xff] (!%p1396_p5)   ;;  %v1591_v8 = vld [vmem:[#allocation3 + $0x44] ss:$8 sps:$4 sm:$0xff] (!%p1396_p5)   ;;  %v1593_v9 = vld [vmem:[#allocation3 + $0x40] ss:$8 sps:$4 sm:$0xff] (!%p1396_p5)  }
  0x60   : > { %v1594_v10 = vld [vmem:[#allocation3 + $0x54] ss:$8 sps:$4 sm:$0xff] (!%p1396_p5)   ;;  %v1596_v11 = vld [vmem:[#allocation3 + $0x50] ss:$8 sps:$4 sm:$0xff] (!%p1396_p5)   ;;  %v1597_v12 = vld [vmem:[#allocation3 + $0x64] ss:$8 sps:$4 sm:$0xff] (!%p1396_p5)   ;;  %615 = vmatprep.mubr.bf16.mxu0 (!%p1396_p5), %v378_v15 }
  0x61   : > { %v1599_v16 = vld [vmem:[#allocation3 + $0x60] ss:$8 sps:$4 sm:$0xff] (!%p1396_p5)   ;;  %v1600_v17 = vld [vmem:[#allocation3 + $0x74] ss:$8 sps:$4 sm:$0xff] (!%p1396_p5)   ;;  %v1602_v18 = vld [vmem:[#allocation3 + $0x70] ss:$8 sps:$4 sm:$0xff] (!%p1396_p5)  }
  0x62   : > { %586 = vmatpush1.bf16.msra.mxu0 (!%p1396_p5), %v1584_v3  ;;  %v1603_v19 = vld [vmem:[#allocation3 + $0x84] ss:$8 sps:$4 sm:$0xff] (!%p1396_p5)   ;;  %v1605_v20 = vld [vmem:[#allocation3 + $0x80] ss:$8 sps:$4 sm:$0xff] (!%p1396_p5)   ;;  %v1606_v21 = vld [vmem:[#allocation3 + $0x94] ss:$8 sps:$4 sm:$0xff] (!%p1396_p5)  }
  0x63   : > { %587 = vmatprep.subr.bf16.mxu0 (!%p1396_p5), %v1585_v4  ;;  %v1608_v22 = vld [vmem:[#allocation3 + $0x90] ss:$8 sps:$4 sm:$0xff] (!%p1396_p5)   ;;  %v1609_v23 = vld [vmem:[#allocation3 + $0xa4] ss:$8 sps:$4 sm:$0xff] (!%p1396_p5)   ;;  %v1611_v24 = vld [vmem:[#allocation3 + $0xa0] ss:$8 sps:$4 sm:$0xff] (!%p1396_p5)  }
  0x64   : > { %v1612_v25 = vld [vmem:[#allocation3 + $0xb4] ss:$8 sps:$4 sm:$0xff]   ;;  %v1614_v26 = vld [vmem:[#allocation3 + $0xb0] ss:$8 sps:$4 sm:$0xff]   ;;  %v1615_v27 = vld [vmem:[#allocation3 + $0xc4] ss:$8 sps:$4 sm:$0xff]  }
  0x65   : > { %v1617_v28 = vld [vmem:[#allocation3 + $0xc0] ss:$8 sps:$4 sm:$0xff]   ;;  %v1618_v29 = vld [vmem:[#allocation3 + $0xd4] ss:$8 sps:$4 sm:$0xff]   ;;  %v1620_v30 = vld [vmem:[#allocation3 + $0xd0] ss:$8 sps:$4 sm:$0xff]  }
  0x66   : > { %588 = vmatpush1.bf16.msra.mxu0 %v1587_v5  ;;  %v1621_v31 = vld [vmem:[#allocation3 + $0xe4] ss:$8 sps:$4 sm:$0xff]   ;;  %v1623_v32 = vld [vmem:[#allocation3 + $0xe0] ss:$8 sps:$4 sm:$0xff]   ;;  %v1624_v33 = vld [vmem:[#allocation3 + $0xf4] ss:$8 sps:$4 sm:$0xff]  }
  0x67   : > { %589 = vmatprep.subr.bf16.mxu0 %v1588_v6  ;;  %v1626_v34 = vld [vmem:[#allocation3 + $0xf0] ss:$8 sps:$4 sm:$0xff]   ;;  %v375_v36 = vld [vmem:[%s2192_s0 + $0x10] sm:$0xff]  ;;  %v414_v39 = vshrl.u32 %v413_v38, 7 }
  0x68   : > { %v373_v35 = vld [vmem:[%s2192_s0] sm:$0xff] }
  0x69   : > { %v377_v37 = vpack.c.bf16 %v375_v36, %v373_v35  ;;  %v2072_v40 = vsub.s32 0, %v414_v39  ;;  %v411_v41 = vld [vmem:[%s2194_s2] sm:$0x3]  ;;  %v2077_v42 = vsub.s32 1, %v414_v39 }
  0x6a   : > { %590 = vmatpush1.bf16.msra.mxu0 %v1590_v7 }
  0x6b   : > { %591 = vmatprep.subr.bf16.mxu0 %v1591_v8  ;;  %v416_v43 = vrot.slane %v411_v41, %v2072_v40  ;;  %v420_v44 = vrot.slane %v411_v41, %v2077_v42 }
  0x6e   : > { %592 = vmatpush1.bf16.msra.mxu0 %v1593_v9 }
  0x6f   : > { %593 = vmatprep.subr.bf16.mxu0 %v1594_v10 }
  0x72   : > { %594 = vmatpush1.bf16.msra.mxu0 %v1596_v11 }
  0x73   : > { %595 = vmatprep.subr.bf16.mxu0 %v1597_v12 }
  0x76   : > { %596 = vmatpush1.bf16.msra.mxu0 %v1599_v16 }
  0x77   : > { %597 = vmatprep.subr.bf16.mxu0 %v1600_v17 }
  0x7a   : > { %598 = vmatpush1.bf16.msra.mxu0 %v1602_v18 }
  0x7b   : > { %599 = vmatprep.subr.bf16.mxu0 %v1603_v19 }
  0x7e   : > { %600 = vmatpush1.bf16.msra.mxu0 %v1605_v20 }
  0x7f   : > { %601 = vmatprep.subr.bf16.mxu0 %v1606_v21 }
  0x82   : > { %602 = vmatpush1.bf16.msra.mxu0 %v1608_v22 }
  0x83   : > { %603 = vmatprep.subr.bf16.mxu0 %v1609_v23 }
  0x86   : > { %604 = vmatpush1.bf16.msra.mxu0 %v1611_v24 }
  0x87   : > { %605 = vmatprep.subr.bf16.mxu0 %v1612_v25 }
  0x8a   : > { %606 = vmatpush1.bf16.msra.mxu0 %v1614_v26 }
  0x8b   : > { %607 = vmatprep.subr.bf16.mxu0 %v1615_v27 }
  0x8e   : > { %608 = vmatpush1.bf16.msra.mxu0 %v1617_v28 }
  0x8f   : > { %609 = vmatprep.subr.bf16.mxu0 %v1618_v29 }
  0x92   : > { %610 = vmatpush1.bf16.msra.mxu0 %v1620_v30 }
  0x93   : > { %611 = vmatprep.subr.bf16.mxu0 %v1621_v31  ;;  %v679_v31 = vld [vmem:[%s2195_s3] sm:$0x3] }
  0x94   : > { %v688_v35 = vrot.slane %v679_v31, %v2077_v42 }
  0x96   : > { %612 = vmatpush1.bf16.msra.mxu0 %v1623_v32 }
  0x97   : > { %613 = vmatprep.subr.bf16.mxu0 %v1624_v33  ;;  %v684_v33 = vrot.slane %v679_v31, %v2072_v40 }
  0x9a   : > { %614 = vmatpush1.bf16.msra.mxu0 %v1626_v34  ;;  %v695_v34 = vld [vmem:[%s2196_s4] sm:$0x3] }
  0x9b   : > { %v700_v39 = vrot.slane %v695_v34, %v2072_v40  ;;  %v704_v41 = vrot.slane %v695_v34, %v2077_v42 }
  0x9d   : > { %616 = vmatmul.mubr.bf16.vlgmr.msra.gmra.mrb[0].mxu0 %v377_v37 }
 0x170   : > { %v617_v45 = vpop.f32.mrb[0].mxu0 }
 0x171   : > { %v618_v46 = vadd.f32 %v617_v45, %v416_v43  ;;  %v619_v47 = vpop.f32.mrb[1].mxu0 }
 0x172   : > { %v620_v48 = vadd.f32 %v619_v47, %v420_v44  ;;  %v621_v49 = vpop.f32.mrb[2].mxu0 }
 0x173   : > { %v630_v50 = vmul.f32 0.70710677, %v618_v46  ;;  %v622_v51 = vadd.f32 %v621_v49, %v416_v43  ;;  %v623_v52 = vpop.f32.mrb[3].mxu0  ;;  %v626_v59 = vmul.f32 0.5, %v618_v46 }
 0x174   : > { %v631_v53 = vmul.f32 0.70710677, %v620_v48  ;;  %v624_v54 = vadd.f32 %v623_v52, %v420_v44  ;;  %v627_v62 = vmul.f32 0.5, %v620_v48 }
 0x175   : > { %1627 = verf.f32 %v630_v50  ;;  %v632_v55 = vmul.f32 0.70710677, %v622_v51  ;;  %v628_v3 = vmul.f32 0.5, %v622_v51 }
 0x176   : > { %1629 = verf.f32 %v631_v53  ;;  %v633_v56 = vmul.f32 0.70710677, %v624_v54  ;;  %v629_v4 = vmul.f32 0.5, %v624_v54 }
 0x177   : > { %1631 = verf.f32 %v632_v55 }
 0x178   : > { %1633 = verf.f32 %v633_v56 }
 0x17f   : > { %v1628_v57 = vpop.eup %1627 }
 0x180   : > { %v1630_v58 = vpop.eup %1629  ;;  %v638_v60 = vadd.f32 1.0, %v1628_v57 }
 0x181   : > { %v1632_v61 = vpop.eup %1631  ;;  %v639_v63 = vadd.f32 1.0, %v1630_v58 }
 0x182   : > { %v1634_v0 = vpop.eup %1633  ;;  %v642_v1 = vmul.f32 %v638_v60, %v626_v59  ;;  %v640_v2 = vadd.f32 1.0, %v1632_v61 }
 0x183   : > { %v643_v5 = vmul.f32 %v639_v63, %v627_v62  ;;  %v641_v6 = vadd.f32 1.0, %v1634_v0 }
 0x184   : > { %v644_v8 = vmul.f32 %v640_v2, %v628_v3 }
 0x185   : > { %v646_v7 = vadd.f32 %v643_v5, %v642_v1  ;;  %v645_v9 = vmul.f32 %v641_v6, %v629_v4 }
 0x187   : > { %647 = vadd.xlane.f32.xlu0 %v646_v7  ;;  %v649_v10 = vadd.f32 %v645_v9, %v644_v8 }
 0x18b   : > { %650 = vadd.xlane.f32.xlu0 %v649_v10 }
 0x214   : > { %v648_v11 = vpop.xlane.xlu0 %647 }
 0x215   : > { %v653_v12 = vmul.f32 0.00390625, %v648_v11 }
 0x217   : > { %v655_v13 = vsub.f32 %v642_v1, %v653_v12  ;;  %v656_v14 = vsub.f32 %v643_v5, %v653_v12 }
 0x218   : > { %v651_v15 = vpop.xlane.xlu0 %650 }
 0x219   : > { %v654_v16 = vmul.f32 0.00390625, %v651_v15  ;;  %v659_v17 = vmul.f32 %v655_v13, %v655_v13  ;;  %v660_v18 = vmul.f32 %v656_v14, %v656_v14 }
 0x21b   : > { %v657_v19 = vsub.f32 %v644_v8, %v654_v16  ;;  %v658_v20 = vsub.f32 %v645_v9, %v654_v16  ;;  %v663_v21 = vadd.f32 %v660_v18, %v659_v17 }
 0x21d   : > { %664 = vadd.xlane.f32.xlu1 %v663_v21  ;;  %v661_v22 = vmul.f32 %v657_v19, %v657_v19  ;;  %v662_v23 = vmul.f32 %v658_v20, %v658_v20 }
 0x21f   : > { %v666_v24 = vadd.f32 %v662_v23, %v661_v22 }
 0x221   : > { %667 = vadd.xlane.f32.xlu1 %v666_v24 }
 0x2aa   : > { %v665_v25 = vpop.xlane.xlu1 %664 }
 0x2ab   : > { %v669_v26 = vmul.f32 0.00390625, %v665_v25 }
 0x2ad   : > { %v671_v27 = vadd.f32 1e-12, %v669_v26 }
 0x2ae   : > { %v668_v28 = vpop.xlane.xlu1 %667 }
 0x2af   : > { %1635 = vrsqrt.f32 %v671_v27  ;;  %v670_v29 = vmul.f32 0.00390625, %v668_v28 }
 0x2b1   : > { %v672_v30 = vadd.f32 1e-12, %v670_v29 }
 0x2b3   : > { %1637 = vrsqrt.f32 %v672_v30 }
 0x2b9   : > { %v1636_v32 = vpop.eup %1635 }
 0x2ba   : > { %v675_v36 = vmul.f32 %v1636_v32, %v655_v13  ;;  %v676_v37 = vmul.f32 %v1636_v32, %v656_v14 }
 0x2bc   : > { %v691_v43 = vmul.f32 %v684_v33, %v675_v36  ;;  %v692_v44 = vmul.f32 %v688_v35, %v676_v37 }
 0x2bd   : > { %v1638_v38 = vpop.eup %1637 }
 0x2be   : > { %v677_v45 = vmul.f32 %v1638_v38, %v657_v19  ;;  %v678_v46 = vmul.f32 %v1638_v38, %v658_v20  ;;  %v707_v49 = vadd.f32 %v700_v39, %v691_v43  ;;  %v708_v50 = vadd.f32 %v704_v41, %v692_v44 }
 0x2c0   : > { %v693_v47 = vmul.f32 %v684_v33, %v677_v45  ;;  %v694_v48 = vmul.f32 %v688_v35, %v678_v46 }
 0x2c2   : > { %v709_v51 = vadd.f32 %v700_v39, %v693_v47  ;;  %v710_v52 = vadd.f32 %v704_v41, %v694_v48 }
 0x2c4   : > { %v711_v53 = vpack.c.bf16 %v709_v51, %v707_v49  ;;  %v712_v54 = vpack.c.bf16 %v710_v52, %v708_v50 }
 0x2c6   : > { %713 = vst [vmem:[#allocation2] sm:$0xff] %v711_v53  ;;  %714 = vst [vmem:[#allocation2 + $0x8] sm:$0xff] %v712_v54 }
 0x2c7 PF: > { %v1639_v40 = vld [vmem:[%s2044_s22 + $0x4] ss:$16 sps:$4 sm:$0xff]   ;;  %v1641_v42 = vld [vmem:[%s2044_s22 + $0xc] ss:$16 sps:$4 sm:$0xff]   ;;  %v1643_v55 = vld [vmem:[%s2044_s22] ss:$16 sps:$4 sm:$0xff]  }
 0x2c8   : > { %1123 = vmatprep.subr.bf16.mxu0 %v1639_v40  ;;  %v1644_v56 = vld [vmem:[%s2044_s22 + $0x8] ss:$16 sps:$4 sm:$0xff]   ;;  %1166 = vmatprep.subr.bf16.mxu1 %v1641_v42  ;;  %v1645_v57 = vld [vmem:[%s2044_s22 + $0x24] ss:$16 sps:$4 sm:$0xff]   ;;  %v1647_v58 = vld [vmem:[%s2044_s22 + $0x2c] ss:$16 sps:$4 sm:$0xff]  }
 0x2c9   : > { %1124 = vmatpush1.bf16.msra.mxu0 %v1643_v55  ;;  %1167 = vmatpush1.bf16.msra.mxu1 %v1644_v56  ;;  %v1649_v59 = vld [vmem:[%s2044_s22 + $0x20] ss:$16 sps:$4 sm:$0xff]   ;;  %v1650_v60 = vld [vmem:[%s2044_s22 + $0x28] ss:$16 sps:$4 sm:$0xff]   ;;  %v1651_v61 = vld [vmem:[%s2044_s22 + $0x44] ss:$16 sps:$4 sm:$0xff]   ;;  %v783_v55 = vlaneseq }
 0x2ca   : > { %1125 = vmatprep.subr.bf16.mxu0 %v1645_v57  ;;  %1168 = vmatprep.subr.bf16.mxu1 %v1647_v58  ;;  %v1653_v62 = vld [vmem:[%s2044_s22 + $0x4c] ss:$16 sps:$4 sm:$0xff]   ;;  %v1655_v63 = vld [vmem:[%s2044_s22 + $0x40] ss:$16 sps:$4 sm:$0xff]   ;;  %v1656_v0 = vld [vmem:[%s2044_s22 + $0x48] ss:$16 sps:$4 sm:$0xff]  }
 0x2cb   : > { %v1657_v1 = vld [vmem:[%s2044_s22 + $0x64] ss:$16 sps:$4 sm:$0xff]   ;;  %v1659_v2 = vld [vmem:[%s2044_s22 + $0x6c] ss:$16 sps:$4 sm:$0xff]   ;;  %v1661_v3 = vld [vmem:[%s2044_s22 + $0x60] ss:$16 sps:$4 sm:$0xff]  }
 0x2cc   : > { %v1662_v4 = vld [vmem:[%s2044_s22 + $0x68] ss:$16 sps:$4 sm:$0xff]   ;;  %v1663_v5 = vld [vmem:[%s2044_s22 + $0x84] ss:$16 sps:$4 sm:$0xff]   ;;  %v1665_v6 = vld [vmem:[%s2044_s22 + $0x8c] ss:$16 sps:$4 sm:$0xff]  }
 0x2cd   : > { %1126 = vmatpush1.bf16.msra.mxu0 %v1649_v59  ;;  %1169 = vmatpush1.bf16.msra.mxu1 %v1650_v60  ;;  %v1667_v7 = vld [vmem:[%s2044_s22 + $0x80] ss:$16 sps:$4 sm:$0xff]   ;;  %v1668_v8 = vld [vmem:[%s2044_s22 + $0x88] ss:$16 sps:$4 sm:$0xff]   ;;  %v1669_v9 = vld [vmem:[%s2044_s22 + $0xa4] ss:$16 sps:$4 sm:$0xff]  }
 0x2ce   : > { %1127 = vmatprep.subr.bf16.mxu0 %v1651_v61  ;;  %1170 = vmatprep.subr.bf16.mxu1 %v1653_v62  ;;  %v1671_v10 = vld [vmem:[%s2044_s22 + $0xac] ss:$16 sps:$4 sm:$0xff]   ;;  %v1673_v11 = vld [vmem:[%s2044_s22 + $0xa0] ss:$16 sps:$4 sm:$0xff]   ;;  %v1674_v12 = vld [vmem:[%s2044_s22 + $0xa8] ss:$16 sps:$4 sm:$0xff]  }
 0x2cf   : > { %v1675_v13 = vld [vmem:[%s2044_s22 + $0xc4] ss:$16 sps:$4 sm:$0xff]   ;;  %v1677_v14 = vld [vmem:[%s2044_s22 + $0xcc] ss:$16 sps:$4 sm:$0xff]   ;;  %v1679_v15 = vld [vmem:[%s2044_s22 + $0xc0] ss:$16 sps:$4 sm:$0xff]  }
 0x2d0   : > { %v1680_v16 = vld [vmem:[%s2044_s22 + $0xc8] ss:$16 sps:$4 sm:$0xff]   ;;  %v1681_v17 = vld [vmem:[%s2044_s22 + $0xe4] ss:$16 sps:$4 sm:$0xff]   ;;  %v1683_v18 = vld [vmem:[%s2044_s22 + $0xec] ss:$16 sps:$4 sm:$0xff]  }
 0x2d1   : > { %1128 = vmatpush1.bf16.msra.mxu0 %v1655_v63  ;;  %1171 = vmatpush1.bf16.msra.mxu1 %v1656_v0  ;;  %v1685_v19 = vld [vmem:[%s2044_s22 + $0xe0] ss:$16 sps:$4 sm:$0xff]   ;;  %v1686_v20 = vld [vmem:[%s2044_s22 + $0xe8] ss:$16 sps:$4 sm:$0xff]   ;;  %v1687_v21 = vld [vmem:[%s2044_s22 + $0x104] ss:$16 sps:$4 sm:$0xff]  }
 0x2d2   : > { %1129 = vmatprep.subr.bf16.mxu0 %v1657_v1  ;;  %1172 = vmatprep.subr.bf16.mxu1 %v1659_v2  ;;  %v1689_v22 = vld [vmem:[%s2044_s22 + $0x10c] ss:$16 sps:$4 sm:$0xff]   ;;  %v1691_v23 = vld [vmem:[%s2044_s22 + $0x100] ss:$16 sps:$4 sm:$0xff]   ;;  %v1692_v24 = vld [vmem:[%s2044_s22 + $0x108] ss:$16 sps:$4 sm:$0xff]  }
 0x2d3   : > { %v1693_v25 = vld [vmem:[%s2044_s22 + $0x124] ss:$16 sps:$4 sm:$0xff]   ;;  %v1695_v26 = vld [vmem:[%s2044_s22 + $0x12c] ss:$16 sps:$4 sm:$0xff]   ;;  %v1697_v27 = vld [vmem:[%s2044_s22 + $0x120] ss:$16 sps:$4 sm:$0xff]  }
 0x2d4   : > { %v1698_v28 = vld [vmem:[%s2044_s22 + $0x128] ss:$16 sps:$4 sm:$0xff]   ;;  %v1699_v29 = vld [vmem:[%s2044_s22 + $0x144] ss:$16 sps:$4 sm:$0xff]   ;;  %v1701_v30 = vld [vmem:[%s2044_s22 + $0x14c] ss:$16 sps:$4 sm:$0xff]  }
 0x2d5   : > { %1130 = vmatpush1.bf16.msra.mxu0 %v1661_v3  ;;  %1173 = vmatpush1.bf16.msra.mxu1 %v1662_v4  ;;  %v1703_v31 = vld [vmem:[%s2044_s22 + $0x140] ss:$16 sps:$4 sm:$0xff]   ;;  %v1704_v32 = vld [vmem:[%s2044_s22 + $0x148] ss:$16 sps:$4 sm:$0xff]   ;;  %v1705_v33 = vld [vmem:[%s2044_s22 + $0x164] ss:$16 sps:$4 sm:$0xff]  }
 0x2d6   : > { %1131 = vmatprep.subr.bf16.mxu0 %v1663_v5  ;;  %1174 = vmatprep.subr.bf16.mxu1 %v1665_v6  ;;  %v1707_v34 = vld [vmem:[%s2044_s22 + $0x16c] ss:$16 sps:$4 sm:$0xff]   ;;  %v1709_v36 = vld [vmem:[%s2044_s22 + $0x160] ss:$16 sps:$4 sm:$0xff]   ;;  %v1710_v37 = vld [vmem:[%s2044_s22 + $0x168] ss:$16 sps:$4 sm:$0xff]  }
 0x2d7   : > { %v716_v35 = vld [vmem:[#allocation2 + $0x8] sm:$0xff]  ;;  %v1711_v38 = vld [vmem:[%s2044_s22 + $0x184] ss:$16 sps:$4 sm:$0xff]   ;;  %v1715_v41 = vld [vmem:[%s2044_s22 + $0x180] ss:$16 sps:$4 sm:$0xff]   ;;  %v784_v56 = vshrl.u32 %v783_v55, 7 }
 0x2d8   : > { %1155 = vmatprep.mubr.bf16.mxu0 %v716_v35  ;;  %1198 = vmatprep.mubr.bf16.mxu1 %v716_v35  ;;  %v1713_v39 = vld [vmem:[%s2044_s22 + $0x18c] ss:$16 sps:$4 sm:$0xff]   ;;  %v1716_v43 = vld [vmem:[%s2044_s22 + $0x188] ss:$16 sps:$4 sm:$0xff]   ;;  %v1717_v44 = vld [vmem:[%s2044_s22 + $0x1a4] ss:$16 sps:$4 sm:$0xff]  }
 0x2d9   : > { %1132 = vmatpush1.bf16.msra.mxu0 %v1667_v7  ;;  %1175 = vmatpush1.bf16.msra.mxu1 %v1668_v8  ;;  %v1719_v45 = vld [vmem:[%s2044_s22 + $0x1ac] ss:$16 sps:$4 sm:$0xff]   ;;  %v1721_v46 = vld [vmem:[%s2044_s22 + $0x1a0] ss:$16 sps:$4 sm:$0xff]   ;;  %v1722_v47 = vld [vmem:[%s2044_s22 + $0x1a8] ss:$16 sps:$4 sm:$0xff]  }
 0x2da   : > { %1133 = vmatprep.subr.bf16.mxu0 %v1669_v9  ;;  %1176 = vmatprep.subr.bf16.mxu1 %v1671_v10  ;;  %v1723_v48 = vld [vmem:[%s2044_s22 + $0x1c4] ss:$16 sps:$4 sm:$0xff]   ;;  %v1725_v49 = vld [vmem:[%s2044_s22 + $0x1cc] ss:$16 sps:$4 sm:$0xff]   ;;  %v1727_v50 = vld [vmem:[%s2044_s22 + $0x1c0] ss:$16 sps:$4 sm:$0xff]  }
 0x2db   : > { %v1728_v51 = vld [vmem:[%s2044_s22 + $0x1c8] ss:$16 sps:$4 sm:$0xff]   ;;  %v1729_v52 = vld [vmem:[%s2044_s22 + $0x1e4] ss:$16 sps:$4 sm:$0xff]   ;;  %v1731_v53 = vld [vmem:[%s2044_s22 + $0x1ec] ss:$16 sps:$4 sm:$0xff]  }
 0x2dc   : > { %v1733_v54 = vld [vmem:[%s2044_s22 + $0x1e0] ss:$16 sps:$4 sm:$0xff]   ;;  %v1734_v40 = vld [vmem:[%s2044_s22 + $0x1e8] ss:$16 sps:$4 sm:$0xff]   ;;  %v785_v57 = vsub.s32 0, %v784_v56  ;;  %v793_v58 = vsub.s32 2, %v784_v56 }
 0x2dd   : > { %1134 = vmatpush1.bf16.msra.mxu0 %v1673_v11  ;;  %1177 = vmatpush1.bf16.msra.mxu1 %v1674_v12  ;;  %v715_v42 = vld [vmem:[#allocation2] sm:$0xff]  ;;  %v789_v60 = vsub.s32 1, %v784_v56  ;;  %v797_v61 = vsub.s32 3, %v784_v56  ;;  %p2220_p9 = scmp.ne.s32.totalorder %s2210_s10, 0 }
 0x2de   : > { %1135 = vmatprep.subr.bf16.mxu0 %v1675_v13  ;;  %1178 = vmatprep.subr.bf16.mxu1 %v1677_v14  ;;  %v781_v59 = vld [vmem:[%s365_s12] sm:$0xf]  ;;  %s1507_s22 = sshll.u32 (%p2220_p9), %s1839_s27, 4  ;;  %s2221_s17 = sld [smem:[#allocation11_spill]] (%p2220_p9) }
 0x2df   : > { %v786_v62 = vrot.slane %v781_v59, %v785_v57  ;;  %v794_v63 = vrot.slane %v781_v59, %v793_v58  ;;  %v790_v0 = vrot.slane %v781_v59, %v789_v60  ;;  %v798_v1 = vrot.slane %v781_v59, %v797_v61 }
 0x2e1   : > { %1136 = vmatpush1.bf16.msra.mxu0 %v1679_v15  ;;  %1179 = vmatpush1.bf16.msra.mxu1 %v1680_v16 }
 0x2e2   : > { %1137 = vmatprep.subr.bf16.mxu0 %v1681_v17  ;;  %1180 = vmatprep.subr.bf16.mxu1 %v1683_v18 }
 0x2e4   : > { %s1249_s19 = scalar_lea.vmem (%p2220_p9), %s2221_s17, %s1507_s22 }
 0x2e5   : > { %1138 = vmatpush1.bf16.msra.mxu0 %v1685_v19  ;;  %1181 = vmatpush1.bf16.msra.mxu1 %v1686_v20 }
 0x2e6   : > { %1139 = vmatprep.subr.bf16.mxu0 %v1687_v21  ;;  %1182 = vmatprep.subr.bf16.mxu1 %v1689_v22 }
 0x2e9   : > { %1140 = vmatpush1.bf16.msra.mxu0 %v1691_v23  ;;  %1183 = vmatpush1.bf16.msra.mxu1 %v1692_v24 }
 0x2ea   : > { %1141 = vmatprep.subr.bf16.mxu0 %v1693_v25  ;;  %1184 = vmatprep.subr.bf16.mxu1 %v1695_v26 }
 0x2ed   : > { %1142 = vmatpush1.bf16.msra.mxu0 %v1697_v27  ;;  %1185 = vmatpush1.bf16.msra.mxu1 %v1698_v28 }
 0x2ee   : > { %1143 = vmatprep.subr.bf16.mxu0 %v1699_v29  ;;  %1186 = vmatprep.subr.bf16.mxu1 %v1701_v30 }
 0x2f1   : > { %1144 = vmatpush1.bf16.msra.mxu0 %v1703_v31  ;;  %1187 = vmatpush1.bf16.msra.mxu1 %v1704_v32 }
 0x2f2   : > { %1145 = vmatprep.subr.bf16.mxu0 %v1705_v33  ;;  %1188 = vmatprep.subr.bf16.mxu1 %v1707_v34 }
 0x2f5   : > { %1146 = vmatpush1.bf16.msra.mxu0 %v1709_v36  ;;  %1189 = vmatpush1.bf16.msra.mxu1 %v1710_v37 }
 0x2f6   : > { %1147 = vmatprep.subr.bf16.mxu0 %v1711_v38  ;;  %1190 = vmatprep.subr.bf16.mxu1 %v1713_v39 }
 0x2f9   : > { %1148 = vmatpush1.bf16.msra.mxu0 %v1715_v41  ;;  %1191 = vmatpush1.bf16.msra.mxu1 %v1716_v43 }
 0x2fa   : > { %1149 = vmatprep.subr.bf16.mxu0 %v1717_v44  ;;  %1192 = vmatprep.subr.bf16.mxu1 %v1719_v45 }
 0x2fd   : > { %1150 = vmatpush1.bf16.msra.mxu0 %v1721_v46  ;;  %1193 = vmatpush1.bf16.msra.mxu1 %v1722_v47 }
 0x2fe   : > { %1151 = vmatprep.subr.bf16.mxu0 %v1723_v48  ;;  %1194 = vmatprep.subr.bf16.mxu1 %v1725_v49 }
 0x301   : > { %1152 = vmatpush1.bf16.msra.mxu0 %v1727_v50  ;;  %1195 = vmatpush1.bf16.msra.mxu1 %v1728_v51 }
 0x302   : > { %1153 = vmatprep.subr.bf16.mxu0 %v1729_v52  ;;  %1196 = vmatprep.subr.bf16.mxu1 %v1731_v53 }
 0x305   : > { %1154 = vmatpush1.bf16.msra.mxu0 %v1733_v54  ;;  %1197 = vmatpush1.bf16.msra.mxu1 %v1734_v40 }
 0x308   : > { %1156 = vmatmul.mubr.bf16.vlgmr.msra.gmra.mrb[0].mxu0 %v715_v42  ;;  %1199 = vmatmul.mubr.bf16.vlgmr.msra.gmra.mrb[0].mxu1 %v715_v42 }
 0x3db   : > { %v1157_v2 = vpop.f32.mrb[0].mxu0  ;;  %v1200_v3 = vpop.f32.mrb[0].mxu1 }
 0x3dc   : > { %v1158_v4 = vadd.f32 %v1157_v2, %v786_v62  ;;  %v1201_v5 = vadd.f32 %v1200_v3, %v794_v63  ;;  %v1159_v6 = vpop.f32.mrb[1].mxu0  ;;  %v1202_v7 = vpop.f32.mrb[1].mxu1 }
 0x3dd   : > { %v1160_v8 = vadd.f32 %v1159_v6, %v790_v0  ;;  %v1203_v9 = vadd.f32 %v1202_v7, %v798_v1  ;;  %v1161_v10 = vpop.f32.mrb[2].mxu0  ;;  %v1204_v11 = vpop.f32.mrb[2].mxu1  ;;  %1243 = sbr.rel (!%p2220_p9) target bundleno = 1004 (0x3ec), region = 64 }
 0x3de   : > { %v1162_v12 = vadd.f32 %v1161_v10, %v786_v62  ;;  %v1205_v13 = vadd.f32 %v1204_v11, %v794_v63  ;;  %v1163_v14 = vpop.f32.mrb[3].mxu0  ;;  %v1206_v15 = vpop.f32.mrb[3].mxu1 }
 0x3df   : > { %v1503_v16 = vpack.c.bf16 %v1160_v8, %v1158_v4  ;;  %v1504_v17 = vpack.c.bf16 %v1203_v9, %v1201_v5  ;;  %v1164_v18 = vadd.f32 %v1163_v14, %v790_v0  ;;  %v1207_v19 = vadd.f32 %v1206_v15, %v798_v1 }
 0x3e1   : > { %1233 = vst [vmem:[%s2057_s18] sm:$0xff] %v1503_v16  ;;  %1234 = vst [vmem:[%s2057_s18 + $0x8] sm:$0xff] %v1504_v17  ;;  %v1505_v20 = vpack.c.bf16 %v1164_v18, %v1162_v12  ;;  %v1506_v21 = vpack.c.bf16 %v1207_v19, %v1205_v13 }
 0x3e3   : > { %1235 = vst [vmem:[%s2057_s18 + $0x10] sm:$0xff] %v1505_v20  ;;  %1236 = vst [vmem:[%s2057_s18 + $0x18] sm:$0xff] %v1506_v21 }
 0x3e8   : > { %v1262_v22 = vld [vmem:[%s2057_s18] sm:$0xff]  ;;  %v1264_v23 = vld [vmem:[%s2057_s18 + $0x8] sm:$0xff] }
 0x3e9   : > { %1263 = vst [vmem:[%s1249_s19] sm:$0xff] %v1262_v22  ;;  %1265 = vst [vmem:[%s1249_s19 + $0x8] sm:$0xff] %v1264_v23 }
 0x3ea   : > { %v1266_v24 = vld [vmem:[%s2057_s18 + $0x10] sm:$0xff]  ;;  %v1268_v25 = vld [vmem:[%s2057_s18 + $0x18] sm:$0xff] }
 0x3eb   : > { %1267 = vst [vmem:[%s1249_s19 + $0x20] sm:$0xff] %v1266_v24  ;;  %1269 = vst [vmem:[%s1249_s19 + $0x28] sm:$0xff] %v1268_v25 }
 0x3ec PF: > { %s2222_s10 = sld [smem:[#allocation10_spill]]  ;;  %s2223_s24 = smov %s1831_s25 }
 0x3ed   : > { %s2224_s25 = smov %s1835_s26  ;;  %s2225_s26 = smov %s2005_s13 }
 0x3ee   : > { %s2226_s27 = smov %s1843_s28  ;;  %s2227_s28 = smov %s2229_s16 }
 0x3f2   : > { %s21_s29 = sadd.s32 1, %s2222_s10  }
 0x3f3   : > { %p18_p11 = scmp.ge.s32.totalorder %s21_s29, 4  }
 0x3f5   :  { %20 = sbr.rel (!%p18_p11) target bundleno = 7 (0x7), region = 126 }
 0x3fc   :  { %1285 = vsyncpa [#allocation4], 1 }
 0x3fd   :  { %1287 = vsyncpa [#allocation4 + $0x1], 1 }
 0x3fe   :  { %1288 = vsyncpa [#allocation6], 1 }
 0x3ff   :  { %1290 = vsyncpa [#allocation6 + $0x1], 1 }

</bundles_post_ra>
